<compile_context>
chip_gen: v7x
topology: tpu7x:2x2x1
jax: 0.10.0
libtpu: 0.0.40
codegen_flags: <defaults>
</compile_context>

<pallas_src>
import functools

import jax
import jax.numpy as jnp
from jax.experimental import pallas as pl
from jax.experimental.pallas import tpu as pltpu


_STEP_BYTE_BUDGET = 10 * 1024 * 1024   # in-block + out-block per grid step (x2 double-buffered)
_VMEM_LIMIT_BYTES = 32 * 1024 * 1024   # explicit scoped-VMEM limit (v5e default is only 16 MiB)
_MIN_ROW_TILES = 8                     # aim for >= 8 row tiles when R permits
_LANE = 128


def _round_up(v, m):
    return -(-v // m) * m


def _round_down(v, m):
    return (v // m) * m


def _padding_kernel(x_ref, o_ref, *, L, TC, first_pad_block, last_rel):
    # x_ref, o_ref: (TR, TC) blocks.  Output column block j covers output columns
    # [j*TC, (j+1)*TC).  The input index_map clamps the column block index to the last
    # valid input block, so for pad-affected blocks the row's last valid element sits
    # at lane `last_rel` of x_ref.
    j = pl.program_id(1)

    @pl.when(j < first_pad_block)
    def _copy():
        # Column block entirely left of L: straight, unmasked vld -> vst copy.
        o_ref[...] = x_ref[...]

    @pl.when(j >= first_pad_block)
    def _pad_tail():
        x = x_ref[...]
        last = x[:, last_rel:last_rel + 1]                         # (TR, 1)
        col = j * TC + jax.lax.broadcasted_iota(jnp.int32, x.shape, 1)
        # Lanes with global column < L keep x (garbage lanes from ragged reads are
        # masked out here); lanes >= L get the broadcast last element.  Writes past
        # L_out on the ragged last block are masked by Pallas.
        o_ref[...] = jnp.where(col < L, x, last)


def padding_forward(x, patch_size, *, force_pallas=False, block_cols=None):
    """x: (B, D, L) -> (B, D, L + pad) with pad = patch_size - L % patch_size."""
    B, D, L = x.shape
    pad = patch_size - (L % patch_size)     # static python int; always >= 1
    L_out = L + pad
    itemsize = jnp.dtype(x.dtype).itemsize

    # Small-problem fallback: a <128-lane output block lowers to masked partial stores
    # and narrow DMAs; XLA's native concat matches or beats a kernel launch there.
    if not force_pallas and (L_out < _LANE or B * D * L_out * itemsize < (1 << 16)):
        last = x[:, :, -1:]
        return jnp.concatenate([x, jnp.broadcast_to(last, (B, D, pad))], axis=2)

    R = B * D
    x2 = x.reshape(R, L)

    # Sublane pack of the dtype: 8 for 4-byte, 16 for 2-byte, 32 for 1-byte elements.
    pack = max(8, 32 // itemsize)

    # ---- column tile (multiple of 128 lanes; full row width when the budget allows) ----
    min_tr = R if R < pack else pack
    tc_full = _round_up(L_out, _LANE)
    if block_cols is not None:
        TC = block_cols                     # test/override hook
    elif 2 * min_tr * tc_full * itemsize <= _STEP_BYTE_BUDGET:
        TC = tc_full                        # one column block covers the whole row
    else:
        TC = max(_LANE, _round_down(_STEP_BYTE_BUDGET // (2 * min_tr * itemsize), _LANE))

    # ---- row tile: byte-capped, sublane-pack aligned, >= _MIN_ROW_TILES tiles if R permits ----
    tr_bytes = max(pack, _STEP_BYTE_BUDGET // (2 * TC * itemsize))
    tr_split = _round_up(pl.cdiv(R, _MIN_ROW_TILES), pack)
    TR = max(pack, _round_down(min(tr_bytes, tr_split), pack))
    if TR >= R:
        TR = R                              # single row block: full-dim block is legal

    n_in_col_blocks = pl.cdiv(L, TC)
    grid = (pl.cdiv(R, TR), pl.cdiv(L_out, TC))
    first_pad_block = L // TC                              # first output col block touched by pad
    last_rel = (L - 1) - (n_in_col_blocks - 1) * TC        # lane of x[:, L-1] in last input block

    kernel = functools.partial(_padding_kernel, L=L, TC=TC,
                               first_pad_block=first_pad_block, last_rel=last_rel)

    out2 = pl.pallas_call(
        kernel,
        out_shape=jax.ShapeDtypeStruct((R, L_out), x.dtype),
        grid=grid,
        in_specs=[pl.BlockSpec(
            (TR, TC), lambda i, j: (i, jnp.minimum(j, n_in_col_blocks - 1)))],
        out_specs=pl.BlockSpec((TR, TC), lambda i, j: (i, j)),
        compiler_params=pltpu.CompilerParams(
            dimension_semantics=("parallel", "parallel"),
            vmem_limit_bytes=_VMEM_LIMIT_BYTES),
    )(x2)

    return out2.reshape(B, D, L_out)


def _reference(x, patch_size):
    """Pure-JAX reference mirroring the PyTorch forward."""
    B, D, L = x.shape
    pad = patch_size - (L % patch_size)
    last = x[:, :, -1:]
    return jnp.concatenate([x, jnp.broadcast_to(last, (B, D, pad))], axis=2)


def _check(out, ref, name):
    assert out.shape == ref.shape, f"{name}: shape {out.shape} != {ref.shape}"
    assert bool(jnp.array_equal(out, ref)), f"{name}: value mismatch vs reference"


if __name__ == "__main__":
    key = jax.random.PRNGKey(0)
    k1, k2, k3 = jax.random.split(key, 3)

    # 1) Tiny module-sized case (B=2, D=4, L=16): default dispatch -> XLA fallback path.
    x_small = jax.random.normal(k1, (2, 4, 16), dtype=jnp.float32)
    out = jax.block_until_ready(padding_forward(x_small, 12))
    _check(out, _reference(x_small, 12), "tiny/fallback, non-divisible")

    # 2) Same tiny case forced through the Pallas kernel (grid (1,1), ragged everywhere).
    out = jax.block_until_ready(padding_forward(x_small, 12, force_pallas=True))
    _check(out, _reference(x_small, 12), "tiny/pallas, non-divisible")

    # 3) Divisible case (torch still pads by a full patch), forced Pallas.
    out = jax.block_until_ready(padding_forward(x_small, 8, force_pallas=True))
    _check(out, _reference(x_small, 8), "tiny/pallas, divisible")

    # 4) Medium case, default dispatch -> Pallas path with 8 row tiles, single column block.
    x_med = jax.random.normal(k2, (4, 16, 384), dtype=jnp.float32)
    out = jax.block_until_ready(padding_forward(x_med, 100))
    _check(out, _reference(x_med, 100), "medium/pallas f32")

    # 5) Forced multi-column-block tiling (exercises both the pure-copy branch and the
    #    pad branch with a ragged input block).
    x_cols = jax.random.normal(k3, (2, 8, 200), dtype=jnp.float32)
    out = jax.block_until_ready(
        padding_forward(x_cols, 128, force_pallas=True, block_cols=128))
    _check(out, _reference(x_cols, 128), "forced column tiling")

    # 6) bf16 case (sublane pack = 16 path).
    x_bf16 = jax.random.normal(k2, (4, 32, 256), dtype=jnp.bfloat16)
    out = jax.block_until_ready(padding_forward(x_bf16, 96))
    _check(out, _reference(x_bf16, 96), "medium/pallas bf16")

    print("KERNEL_OK")
</pallas_src>

<mosaic_0001>
module attributes {stable_mosaic.version = 11 : i64} {
  func.func @_padding_kernel(%arg0: i32, %arg1: i32, %arg2: memref<8x128xf32, #tpu.memory_space<vmem>>, %arg3: memref<8x128xf32, #tpu.memory_space<vmem>>) attributes {dimension_semantics = [#tpu.dimension_semantics<parallel>, #tpu.dimension_semantics<parallel>], iteration_bounds = array<i64: 1, 1>, scalar_prefetch = 0 : i64, scratch_operands = 0 : i64, tpu.core_type = #tpu.core_type<tc>, window_params = [{transform_indices = @transform_0, window_bounds = array<i64: 8, 128>}, {transform_indices = @transform_1, window_bounds = array<i64: 8, 128>}]} {
    %c0_i32 = arith.constant 0 : i32
    %0 = arith.cmpi slt, %arg1, %c0_i32 : i32
    %1 = arith.extui %0 : i1 to i32
    %c0_i32_0 = arith.constant 0 : i32
    %2 = arith.cmpi ne, %1, %c0_i32_0 : i32
    scf.if %2 {
      %c0 = arith.constant 0 : index
      %c0_3 = arith.constant 0 : index
      %6 = vector.load %arg2[%c0, %c0_3] : memref<8x128xf32, #tpu.memory_space<vmem>>, vector<8x128xf32>
      %c0_4 = arith.constant 0 : index
      %c0_5 = arith.constant 0 : index
      %7 = vector.load %arg3[%c0_4, %c0_5] : memref<8x128xf32, #tpu.memory_space<vmem>>, vector<8x128xf32>
      tpu.vector_store %arg3[%c0_4, %c0_5], %6 {strides = array<i32>} : memref<8x128xf32, #tpu.memory_space<vmem>>, vector<8x128xf32>,
    } else {
    }
    %c0_i32_1 = arith.constant 0 : i32
    %3 = arith.cmpi sge, %arg1, %c0_i32_1 : i32
    %4 = arith.extui %3 : i1 to i32
    %c0_i32_2 = arith.constant 0 : i32
    %5 = arith.cmpi ne, %4, %c0_i32_2 : i32
    scf.if %5 {
      %c0 = arith.constant 0 : index
      %c0_3 = arith.constant 0 : index
      %6 = vector.load %arg2[%c0, %c0_3] : memref<8x128xf32, #tpu.memory_space<vmem>>, vector<8x128xf32>
      %7 = vector.extract_strided_slice %6 {offsets = [0, 15], sizes = [8, 1], strides = [1, 1]} : vector<8x128xf32> to vector<8x1xf32>
      %c128_i32 = arith.constant 128 : i32
      %8 = arith.muli %arg1, %c128_i32 : i32
      %9 = tpu.iota {dimensions = array<i32: 1>} : vector<8x128xi32>
      %10 = vector.broadcast %8 : i32 to vector<8x128xi32>
      %11 = arith.addi %10, %9 : vector<8x128xi32>
      %c16_i32 = arith.constant 16 : i32
      %12 = vector.broadcast %c16_i32 : i32 to vector<8x128xi32>
      %13 = arith.cmpi slt, %11, %12 : vector<8x128xi32>
      %14 = vector.shape_cast %7 : vector<8x1xf32> to vector<8x1xf32>
      %15 = vector.broadcast %14 : vector<8x1xf32> to vector<8x128xf32>
      %16 = arith.select %13, %6, %15 : vector<8x128xi1>, vector<8x128xf32>
      %c0_4 = arith.constant 0 : index
      %c0_5 = arith.constant 0 : index
      %17 = vector.load %arg3[%c0_4, %c0_5] : memref<8x128xf32, #tpu.memory_space<vmem>>, vector<8x128xf32>
      tpu.vector_store %arg3[%c0_4, %c0_5], %16 {strides = array<i32>} : memref<8x128xf32, #tpu.memory_space<vmem>>, vector<8x128xf32>,
    } else {
    }
    return
  }
  func.func @transform_0(%arg0: i32, %arg1: i32) -> (i32, i32) {
    %c0_i32 = arith.constant 0 : i32
    %0 = arith.minsi %arg1, %c0_i32 : i32
    %c0_i32_0 = arith.constant 0 : i32
    return %arg0, %0 : i32, i32
  }
  func.func @transform_1(%arg0: i32, %arg1: i32) -> (i32, i32) {
    %c0_i32 = arith.constant 0 : i32
    return %arg0, %arg1 : i32, i32
  }
}

</mosaic_0001>

<bundles_post_ra>
// kernel: tpu_custom_call.1
= control target key start
LH: loop header
LB: loop body
LE: loop exit
PB: predicated region body
PF: predicated region fallthrough
CT: control target
= control target key end

     0   :  { %6 = vsyncpa [#allocation3], 0  ;;  %s149_s0 = inlined_call_operand.hbm [shape: f32[8,16], index: 0, kind: input, shape index: {}]   ;;  %s150_s1 = inlined_call_operand.hbm [shape: f32[8,24], index: 1, kind: output, shape index: {}]  }
   0x1   :  { %7 = vsyncpa [#allocation4], 0  ;;  %s112_s6 = smov [#allocation2]   ;;  %s64_s10 = scalar_lea.hbm %s149_s0, 128 }
   0x2   :  { %s14_s7 = sshll.u32 %s112_s6, 4  ;;  %p65_p0 = scmp.ne.s32.totalorder %s149_s0, %s64_s10  ;;  %s15_s7 = int_to_ptr.vmem [resolvable:$true] %s14_s7 }
   0x3   :  { %p68_p1 = scmp.lt.u32.totalorder %s64_s10, %s149_s0 }
   0x5   :  { %p70_p2 = pnand %p68_p1, %p65_p0 }
   0x7   :  { %73 = shalt.err (!%p70_p2)
}
   0x8   :  { %s74_s15 = scalar_lea.vmem %s15_s7, 128  ;;  %p79_p4 = scmp.lt.s32.totalorder %s15_s7, %s15_s7 }
   0x9   :  { %p75_p3 = scmp.ne.s32.totalorder %s15_s7, %s74_s15  ;;  %p80_p5 = scmp.lt.s32.totalorder %s74_s15, %s74_s15 }
   0xb   :  { %p81_p6 = por %p80_p5, %p79_p4 }
   0xd   :  { %p82_p7 = pnand %p81_p6, %p75_p3 }
   0xf   :  { %85 = shalt.err (!%p82_p7)
}
  0x10   :  { %17 = dma.hbm_to_vmem [thread:$0]  %s149_s0, 128, %s15_s7, [#allocation3]  }
  0x11   :  { %108 = dma.done.wait [#allocation3], 128  }
  0x12   :  { %109 = vsyncadd [#allocation3], 4294967168  ;;  %v113_v0 = vmov 15   ;;  %v31_v1 = vld [vmem:[#allocation2] sm:$0xff]  ;;  %v33_v2 = vlaneseq  ;;  %s114_s18 = smov [#allocation5]  }
  0x13   :  { %63 = vset.pattern.permute.xlu0 %v113_v0  ;;  %s51_s19 = sshll.u32 %s114_s18, 4  ;;  %s52_s19 = int_to_ptr.vmem [resolvable:$true] %s51_s19 }
  0x14   :  { %40 = vperm.xlu0 %63, %v31_v1   ;;  %v34_v3 = vand.u32 127, %v33_v2  ;;  %s86_s20 = scalar_lea.vmem %s52_s19, 128  ;;  %p91_p9 = scmp.lt.s32.totalorder %s52_s19, %s52_s19 }
  0x15   :  { %p87_p8 = scmp.ne.s32.totalorder %s52_s19, %s86_s20  ;;  %p92_p10 = scmp.lt.s32.totalorder %s86_s20, %s86_s20 }
  0x16   :  { %vm37_vm0 = vcmp.lt.s32.totalorder %v34_v3, 16 }
  0x17   :  { %p93_p11 = por %p92_p10, %p91_p9 }
  0x19   :  { %p94_p12 = pnand %p93_p11, %p87_p8 }
  0x93   :  { %v41_v4 = vpop.permute.xlu0 %40 }
  0x94   :  { %v43_v5 = vsel %vm37_vm0, %v31_v1, %v41_v4 }
  0x95   :  { %44 = vst [vmem:[#allocation5] sm:$0xff] %v43_v5 }
  0x96   :  { %97 = shalt.err (!%p94_p12)
}
  0x97   :  { %s98_s22 = scalar_lea.hbm %s150_s1, 128 }
  0x98   :  { %p99_p13 = scmp.ne.s32.totalorder %s150_s1, %s98_s22  ;;  %p102_p0 = scmp.lt.u32.totalorder %s98_s22, %s150_s1 }
  0x9a   :  { %p104_p1 = pnand %p102_p0, %p99_p13 }
  0x9c   :  { %107 = shalt.err (!%p104_p1)
}
  0x9d   :  { %54 = dma.vmem_to_hbm [thread:$0]  %s52_s19, 128, %s150_s1, [#allocation4]  }
  0x9e   :  { %110 = dma.done.wait [#allocation4], 128  }
  0x9f   :  { %111 = vsyncadd [#allocation4], 4294967168 }
  0xa0   :  { %58 = vsyncpa [#allocation3], 1 }
  0xa1   :  { %59 = vsyncpa [#allocation4], 1 }

</bundles_post_ra>
